<compile_context>
chip_gen: v7x
topology: tpu7x:2x2x1
jax: 0.10.0
libtpu: 0.0.40
codegen_flags: <defaults>
</compile_context>

<pallas_src>
import functools

import jax
import jax.numpy as jnp
from jax import lax
from jax.experimental import pallas as pl
from jax.experimental.pallas import tpu as pltpu

EPS = 1e-5
MOMENTUM = 0.1  # SplineEmbedding builds RunningNorm(actions, eps=1e-5, momentum=0.1)


def _spline_kernel(x_ref, scale_ref, shift_ref, sel_ref, lvl_ref, table_ref, out_ref,
                   *, delta, sub_rows, block_b, n_valid):
    """One grid step: (block_b, A) input rows -> (block_b, A*E) lane-dense output."""
    # Loop-invariant loads, hoisted out of the sub-chunk loop.
    scale = scale_ref[...]          # (1, A)
    shift = shift_ref[...]          # (1, A)
    sel = sel_ref[...]              # (A, rows_p) 0/1 routing matrix (pad cols are 0)
    lvl = lvl_ref[...]              # (1, rows_p) spline level per row (sentinel on pads)
    table = table_ref[...]          # (rows_p, A*E) block-diagonal expanded table

    # Rows of this block that are real (n is static); the rest is padding.
    valid = n_valid - pl.program_id(0) * block_b
    num_sub = block_b // sub_rows

    def body(s, carry):
        off = pl.multiple_of(s * sub_rows, sub_rows)

        @pl.when(off < valid)       # skip fully-padded tail sub-chunks
        def _():
            x = x_ref[pl.ds(off, sub_rows), :]               # (sub, A)

            # RunningNorm folded into one affine, then tanh + clamp (module semantics).
            xn = jnp.tanh(x * scale + shift)
            xn = jnp.clip(xn, -1.0 + 1e-5, 1.0 - 1e-5)

            xd = xn * delta                                  # spline coordinate
            xi = jnp.floor(xd)                               # integer part (bf16-exact)
            xf = xd - xi                                     # fractional part in [0, 1)

            # Route xd to every table row of its action via the (idle) MXU.  Splitting
            # into integer + fractional routing keeps the result accurate regardless of
            # any bf16 rounding of MXU operands (sel is exactly 0/1).
            xd_rep = (jnp.dot(xi, sel, preferred_element_type=jnp.float32)
                      + jnp.dot(xf, sel, preferred_element_type=jnp.float32))

            # Hat (linear-interpolation) basis: weight of row r = max(0, 1-|xd - lvl_r|).
            # Pad rows carry a large sentinel level, so their weight is exactly 0.
            combined = jnp.maximum(0.0, 1.0 - jnp.abs(xd_rep - lvl))

            # Single lane-dense MXU matmul: (sub, rows_p) @ (rows_p, A*E).
            h = jnp.dot(combined, table, preferred_element_type=jnp.float32)
            out_ref[pl.ds(off, sub_rows), :] = h.astype(out_ref.dtype)

        return carry

    lax.fori_loop(0, num_sub, body, 0, unroll=min(4, num_sub))


def spline_embedding_forward(x, running_mean, running_var, weight, bias, table,
                             *, actions, emb, delta, training=True,
                             block_b=None, sub_rows=128, out_dtype=jnp.float32,
                             return_stats=False):
    """Pallas forward for SplineEmbedding. Returns h of shape (n, actions, emb)."""
    n = x.shape[0]
    rows = (2 * delta + 1) * actions
    assert table.shape == (rows, emb)
    assert sub_rows % 8 == 0

    # RunningNorm training-mode buffer update (momentum=0.1, unbiased var). The module
    # updates the buffers first and then normalizes with the *updated* running stats;
    # we do the same.
    if training and n > 1:
        m = jnp.mean(x, axis=0, keepdims=True)
        v = jnp.var(x, axis=0, ddof=1, keepdims=True)   # torch.var is unbiased
        running_mean = running_mean * (1.0 - MOMENTUM) + MOMENTUM * m
        running_var = running_var * (1.0 - MOMENTUM) + MOMENTUM * v
    # TODO(synk): nn.Module mutates its running_mean/running_var buffers in place; here
    # the updated stats are returned functionally when return_stats=True.

    # Fold RunningNorm into a single affine: xn = x * scale + shift.
    scale = (weight / (jnp.sqrt(running_var) + EPS)).astype(jnp.float32)
    shift = (bias - running_mean * scale).astype(jnp.float32)

    # ---- batch tiling -------------------------------------------------------
    if block_b is None:
        # Big tile to amortize per-grid-step overhead; cap so double-buffered in/out
        # tiles stay under ~24 MiB (v7x is the tightest), and so the grid has >= 2
        # steps when the batch allows it (v7x: 2 TensorCores share the 'parallel' axis).
        bytes_per_row = 2 * 4 * (actions * emb + max(actions, 128))
        vmem_rows = max(sub_rows, ((24 << 20) // bytes_per_row) // sub_rows * sub_rows)
        block_b = min(2048, vmem_rows)
        half = pl.cdiv(n, 2 * sub_rows) * sub_rows
        block_b = max(sub_rows, min(block_b, half))
    block_b = max(sub_rows, (block_b // sub_rows) * sub_rows)
    n_pad = pl.cdiv(n, block_b) * block_b
    x_p = x.astype(jnp.float32)
    if n_pad != n:
        x_p = jnp.pad(x_p, ((0, n_pad - n), (0, 0)))

    # ---- wrapper-side constants (built once, tiny) --------------------------
    # Block-diagonal expanded table: row r (action a = r % actions) contributes only to
    # output columns [a*emb, (a+1)*emb). Rows padded (zeros) to a sublane multiple.
    # NOTE: K = (2*delta+1)*actions and table_exp is rows x (actions*emb); for large
    # `actions` this grows O(actions^2) -- split into per-action
    # (sub, 2*delta+1) @ (2*delta+1, emb) matmuls instead in that regime.
    rows_p = ((rows + 7) // 8) * 8
    a_of_r = jnp.arange(rows, dtype=jnp.int32) % actions
    route = (a_of_r[:, None] == jnp.arange(actions, dtype=jnp.int32)[None, :]
             ).astype(jnp.float32)                                   # (rows, A)
    table_exp = (route[:, :, None] * table.astype(jnp.float32)[:, None, :]
                 ).reshape(rows, actions * emb)
    if rows_p != rows:
        table_exp = jnp.pad(table_exp, ((0, rows_p - rows), (0, 0)))

    # Routing matrix sel[a, r] = 1 iff table row r belongs to action a (0 on pad rows).
    sel = jnp.pad(route.T, ((0, 0), (0, rows_p - rows)))              # (A, rows_p)
    # Spline level of each row (r // actions - delta); sentinel on pad rows makes their
    # hat weight exactly 0.
    lvl_rows = (jnp.arange(rows, dtype=jnp.int32) // actions - delta).astype(jnp.float32)
    lvl = jnp.pad(lvl_rows, (0, rows_p - rows),
                  constant_values=float(2 * delta + 2))[None, :]      # (1, rows_p)

    kernel = functools.partial(_spline_kernel, delta=float(delta), sub_rows=sub_rows,
                               block_b=block_b, n_valid=n)

    grid = (n_pad // block_b,)
    out = pl.pallas_call(
        kernel,
        out_shape=jax.ShapeDtypeStruct((n_pad, actions * emb), out_dtype),
        grid_spec=pltpu.PrefetchScalarGridSpec(
            num_scalar_prefetch=0,
            grid=grid,
            in_specs=[
                pl.BlockSpec((block_b, actions), lambda i: (i, 0)),        # x
                pl.BlockSpec((1, actions), lambda i: (0, 0)),              # scale
                pl.BlockSpec((1, actions), lambda i: (0, 0)),              # shift
                pl.BlockSpec((actions, rows_p), lambda i: (0, 0)),         # sel
                pl.BlockSpec((1, rows_p), lambda i: (0, 0)),               # lvl
                pl.BlockSpec((rows_p, actions * emb), lambda i: (0, 0)),   # table_exp
            ],
            out_specs=pl.BlockSpec((block_b, actions * emb), lambda i: (i, 0)),
        ),
        compiler_params=pltpu.CompilerParams(
            dimension_semantics=("parallel",)),
    )(x_p, scale, shift, sel, lvl, table_exp)

    # Free layout plumbing: lane-dense (n, A*E) -> (n, A, E).
    h = out[:n].reshape(n, actions, emb)
    if return_stats:
        return h, running_mean, running_var
    return h


def spline_embedding_ref(x, running_mean, running_var, weight, bias, table,
                         *, actions, emb, delta, training=True):
    """Pure-JAX reference mirroring the PyTorch forward."""
    n = x.shape[0]
    if training and n > 1:
        m = jnp.mean(x, axis=0, keepdims=True)
        v = jnp.var(x, axis=0, ddof=1, keepdims=True)
        running_mean = running_mean * (1.0 - MOMENTUM) + MOMENTUM * m
        running_var = running_var * (1.0 - MOMENTUM) + MOMENTUM * v
    xn = (x - running_mean) / (jnp.sqrt(running_var) + EPS) * weight + bias
    xn = jnp.tanh(xn)
    xn = jnp.clip(xn, -1.0 + 1e-5, 1.0 - 1e-5)
    ind_offset = jnp.arange(actions, dtype=jnp.int32)[None, :]
    xl = jnp.floor(xn * delta)
    xli = actions * (xl.astype(jnp.int32) + delta) + ind_offset
    xl = xl / delta
    xh = jnp.floor(xn * delta + 1.0)
    xhi = actions * (xh.astype(jnp.int32) + delta) + ind_offset
    xh = xh / delta
    bl = table[xli.reshape(-1)].reshape(n, actions, emb)
    bh = table[xhi.reshape(-1)].reshape(n, actions, emb)
    d = 1.0 / delta
    xn3, xl3, xh3 = xn[..., None], xl[..., None], xh[..., None]
    return bh / d * (xn3 - xl3) + bl / d * (xh3 - xn3)


if __name__ == "__main__":
    ACTIONS = 4
    EMB = 32
    DELTA = 4
    N = 16
    ROWS = (2 * DELTA + 1) * ACTIONS  # 36

    key = jax.random.PRNGKey(0)
    kx, ktab = jax.random.split(key)

    x = jax.random.normal(kx, (N, ACTIONS), dtype=jnp.float32)

    # Deterministic parameter / buffer init mirroring the module's __init__:
    running_mean = jnp.zeros((1, ACTIONS), jnp.float32)
    running_var = jnp.ones((1, ACTIONS), jnp.float32)
    weight = jnp.ones((1, ACTIONS), jnp.float32)     # nn.init.ones_
    bias = jnp.zeros((1, ACTIONS), jnp.float32)      # nn.init.zeros_
    table = jax.random.normal(ktab, (ROWS, EMB), dtype=jnp.float32)  # nn.Embedding ~ N(0,1)

    out = spline_embedding_forward(
        x, running_mean, running_var, weight, bias, table,
        actions=ACTIONS, emb=EMB, delta=DELTA, training=True)
    out = jax.block_until_ready(out)

    ref = spline_embedding_ref(
        x, running_mean, running_var, weight, bias, table,
        actions=ACTIONS, emb=EMB, delta=DELTA, training=True)

    assert out.shape == (N, ACTIONS, EMB), out.shape
    max_err = float(jnp.max(jnp.abs(out - ref)))
    assert jnp.allclose(out, ref, rtol=2e-3, atol=2e-3), max_err
    print("KERNEL_OK")
</pallas_src>

<mosaic_0001>
module attributes {stable_mosaic.version = 11 : i64} {
  func.func @_spline_kernel(%arg0: i32, %arg1: memref<128x4xf32, #tpu.memory_space<vmem>>, %arg2: memref<1x4xf32, #tpu.memory_space<vmem>>, %arg3: memref<1x4xf32, #tpu.memory_space<vmem>>, %arg4: memref<4x40xf32, #tpu.memory_space<vmem>>, %arg5: memref<1x40xf32, #tpu.memory_space<vmem>>, %arg6: memref<40x128xf32, #tpu.memory_space<vmem>>, %arg7: memref<128x128xf32, #tpu.memory_space<vmem>>) attributes {dimension_semantics = [#tpu.dimension_semantics<parallel>], iteration_bounds = array<i64: 1>, scalar_prefetch = 0 : i64, scratch_operands = 0 : i64, tpu.core_type = #tpu.core_type<tc>, window_params = [{transform_indices = @transform_0, window_bounds = array<i64: 128, 4>}, {pipeline_mode = #tpu.pipeline_mode<synchronous>, transform_indices = @transform_1, window_bounds = array<i64: 1, 4>}, {pipeline_mode = #tpu.pipeline_mode<synchronous>, transform_indices = @transform_2, window_bounds = array<i64: 1, 4>}, {pipeline_mode = #tpu.pipeline_mode<synchronous>, transform_indices = @transform_3, window_bounds = array<i64: 4, 40>}, {pipeline_mode = #tpu.pipeline_mode<synchronous>, transform_indices = @transform_4, window_bounds = array<i64: 1, 40>}, {pipeline_mode = #tpu.pipeline_mode<synchronous>, transform_indices = @transform_5, window_bounds = array<i64: 40, 128>}, {transform_indices = @transform_6, window_bounds = array<i64: 128, 128>}]} {
    %c0 = arith.constant 0 : index
    %c0_0 = arith.constant 0 : index
    %0 = vector.load %arg2[%c0, %c0_0] : memref<1x4xf32, #tpu.memory_space<vmem>>, vector<1x4xf32>
    %c0_1 = arith.constant 0 : index
    %c0_2 = arith.constant 0 : index
    %1 = vector.load %arg3[%c0_1, %c0_2] : memref<1x4xf32, #tpu.memory_space<vmem>>, vector<1x4xf32>
    %c0_3 = arith.constant 0 : index
    %c0_4 = arith.constant 0 : index
    %2 = vector.load %arg4[%c0_3, %c0_4] : memref<4x40xf32, #tpu.memory_space<vmem>>, vector<4x40xf32>
    %c0_5 = arith.constant 0 : index
    %c0_6 = arith.constant 0 : index
    %3 = vector.load %arg5[%c0_5, %c0_6] : memref<1x40xf32, #tpu.memory_space<vmem>>, vector<1x40xf32>
    %c0_7 = arith.constant 0 : index
    %c0_8 = arith.constant 0 : index
    %4 = vector.load %arg6[%c0_7, %c0_8] : memref<40x128xf32, #tpu.memory_space<vmem>>, vector<40x128xf32>
    %c128_i32 = arith.constant 128 : i32
    %5 = arith.muli %arg0, %c128_i32 : i32
    %c16_i32 = arith.constant 16 : i32
    %6 = arith.subi %c16_i32, %5 : i32
    %c0_i32 = arith.constant 0 : i32
    %c128_i32_9 = arith.constant 128 : i32
    %7 = arith.muli %c0_i32, %c128_i32_9 : i32
    %8 = tpu.assume_multiple %7, 128 : i32
    %9 = arith.cmpi slt, %8, %6 : i32
    %10 = arith.extui %9 : i1 to i32
    %c0_i32_10 = arith.constant 0 : i32
    %11 = arith.cmpi ne, %10, %c0_i32_10 : i32
    scf.if %11 {
      %12 = arith.index_cast %8 : i32 to index
      %c0_11 = arith.constant 0 : index
      %13 = vector.load %arg1[%12, %c0_11] : memref<128x4xf32, #tpu.memory_space<vmem>>, vector<128x4xf32>
      %14 = vector.broadcast %0 : vector<1x4xf32> to vector<128x4xf32>
      %15 = arith.mulf %13, %14 : vector<128x4xf32>
      %16 = vector.broadcast %1 : vector<1x4xf32> to vector<128x4xf32>
      %17 = arith.addf %15, %16 : vector<128x4xf32>
      %18 = math.tanh %17 : vector<128x4xf32>
      %cst = arith.constant -0.999989986 : f32
      %cst_12 = arith.constant 0.999989986 : f32
      %19 = vector.broadcast %cst : f32 to vector<128x4xf32>
      %20 = arith.maximumf %19, %18 : vector<128x4xf32>
      %21 = vector.broadcast %cst_12 : f32 to vector<128x4xf32>
      %22 = arith.minimumf %21, %20 : vector<128x4xf32>
      %cst_13 = arith.constant 4.000000e+00 : f32
      %23 = vector.broadcast %cst_13 : f32 to vector<128x4xf32>
      %24 = arith.mulf %22, %23 : vector<128x4xf32>
      %25 = math.floor %24 : vector<128x4xf32>
      %26 = arith.subf %24, %25 : vector<128x4xf32>
      %cst_14 = arith.constant dense<0.000000e+00> : vector<128x40xf32>
      %27 = tpu.matmul %25, %2, %cst_14 {dimension_numbers = #tpu.dot_dimension_numbers<[1], [0], [0], [1], [0, 0, 1, 1], [], []>} : vector<128x4xf32>, vector<4x40xf32>, vector<128x40xf32> -> vector<128x40xf32>
      %cst_15 = arith.constant dense<0.000000e+00> : vector<128x40xf32>
      %28 = tpu.matmul %26, %2, %cst_15 {dimension_numbers = #tpu.dot_dimension_numbers<[1], [0], [0], [1], [0, 0, 1, 1], [], []>} : vector<128x4xf32>, vector<4x40xf32>, vector<128x40xf32> -> vector<128x40xf32>
      %29 = arith.addf %27, %28 : vector<128x40xf32>
      %30 = vector.broadcast %3 : vector<1x40xf32> to vector<128x40xf32>
      %31 = arith.subf %29, %30 : vector<128x40xf32>
      %32 = math.absf %31 : vector<128x40xf32>
      %cst_16 = arith.constant 1.000000e+00 : f32
      %33 = vector.broadcast %cst_16 : f32 to vector<128x40xf32>
      %34 = arith.subf %33, %32 : vector<128x40xf32>
      %cst_17 = arith.constant 0.000000e+00 : f32
      %35 = vector.broadcast %cst_17 : f32 to vector<128x40xf32>
      %36 = arith.maximumf %35, %34 : vector<128x40xf32>
      %cst_18 = arith.constant dense<0.000000e+00> : vector<128x128xf32>
      %37 = tpu.matmul %36, %4, %cst_18 {dimension_numbers = #tpu.dot_dimension_numbers<[1], [0], [0], [1], [0, 0, 1, 1], [], []>} : vector<128x40xf32>, vector<40x128xf32>, vector<128x128xf32> -> vector<128x128xf32>
      %38 = arith.index_cast %8 : i32 to index
      %c0_19 = arith.constant 0 : index
      %39 = vector.load %arg7[%38, %c0_19] : memref<128x128xf32, #tpu.memory_space<vmem>>, vector<128x128xf32>
      tpu.vector_store %arg7[%38, %c0_19], %37 {strides = array<i32>} : memref<128x128xf32, #tpu.memory_space<vmem>>, vector<128x128xf32>,
    } else {
    }
    %c1_i32 = arith.constant 1 : i32
    return
  }
  func.func @transform_0(%arg0: i32) -> (i32, i32) {
    %c0_i32 = arith.constant 0 : i32
    %c0_i32_0 = arith.constant 0 : i32
    return %arg0, %c0_i32 : i32, i32
  }
  func.func @transform_1(%arg0: i32) -> (i32, i32) {
    %c0_i32 = arith.constant 0 : i32
    %c0_i32_0 = arith.constant 0 : i32
    %c0_i32_1 = arith.constant 0 : i32
    return %c0_i32, %c0_i32_0 : i32, i32
  }
  func.func @transform_2(%arg0: i32) -> (i32, i32) {
    %c0_i32 = arith.constant 0 : i32
    %c0_i32_0 = arith.constant 0 : i32
    %c0_i32_1 = arith.constant 0 : i32
    return %c0_i32, %c0_i32_0 : i32, i32
  }
  func.func @transform_3(%arg0: i32) -> (i32, i32) {
    %c0_i32 = arith.constant 0 : i32
    %c0_i32_0 = arith.constant 0 : i32
    %c0_i32_1 = arith.constant 0 : i32
    return %c0_i32, %c0_i32_0 : i32, i32
  }
  func.func @transform_4(%arg0: i32) -> (i32, i32) {
    %c0_i32 = arith.constant 0 : i32
    %c0_i32_0 = arith.constant 0 : i32
    %c0_i32_1 = arith.constant 0 : i32
    return %c0_i32, %c0_i32_0 : i32, i32
  }
  func.func @transform_5(%arg0: i32) -> (i32, i32) {
    %c0_i32 = arith.constant 0 : i32
    %c0_i32_0 = arith.constant 0 : i32
    %c0_i32_1 = arith.constant 0 : i32
    return %c0_i32, %c0_i32_0 : i32, i32
  }
  func.func @transform_6(%arg0: i32) -> (i32, i32) {
    %c0_i32 = arith.constant 0 : i32
    %c0_i32_0 = arith.constant 0 : i32
    return %arg0, %c0_i32 : i32, i32
  }
}

</mosaic_0001>

<bundles_post_ra>
// kernel: tpu_custom_call.1
= control target key start
LH: loop header
LB: loop body
LE: loop exit
PB: predicated region body
PF: predicated region fallthrough
CT: control target
= control target key end

     0   :  { %vm244_vm0 = vcmask 1043456   ;;  %s1475_s0 = inlined_call_operand.vmem [shape: f32[128,4], index: 0, kind: input, shape index: {}]   ;;  %s1476_s1 = inlined_call_operand.vmem [shape: f32[1,4], index: 1, kind: input, shape index: {}]   ;;  %s1477_s2 = inlined_call_operand.vmem [shape: f32[1,4], index: 2, kind: input, shape index: {}]   ;;  %s1478_s3 = inlined_call_operand.vmem [shape: f32[4,40], index: 3, kind: input, shape index: {}]   ;;  %s1479_s4 = inlined_call_operand.vmem [shape: f32[1,40], index: 4, kind: input, shape index: {}]   ;;  %s1480_s5 = inlined_call_operand.vmem [shape: f32[40,128], index: 5, kind: input, shape index: {}]   ;;  %s1481_s6 = inlined_call_operand.hbm [shape: f32[128,128], index: 6, kind: output, shape index: {}]  }
   0x1   :  { %v1218_v0 = vld [vmem:[%s1478_s3] sm:$0xf]  ;;  %v40_v5 = vld [vmem:[%s1475_s0 + $0x8] sm:$0xff]  ;;  %v41_v6 = vld [vmem:[%s1475_s0 + $0x10] sm:$0xff] }
   0x2   :  { %v882_v1 = vld [vmem:[%s1476_s1] ss:$0 sm:$0xff]  ;;  %1006 = vmatprep.subr.msk.mxu0 %vm244_vm0, %v1218_v0  ;;  %1100 = vmatprep.subr.msk.mxu1 %vm244_vm0, %v1218_v0  ;;  %v42_v9 = vld [vmem:[%s1475_s0 + $0x18] sm:$0xff]  ;;  %v44_v11 = vld [vmem:[%s1475_s0 + $0x28] sm:$0xff] }
   0x3   :  { %v39_v2 = vld [vmem:[%s1475_s0] sm:$0xff]  ;;  %1007 = vmatpush3.msk.msra.mxu0 %vm244_vm0, %v1218_v0  ;;  %v62_v7 = vmul.f32 %v882_v1, %v40_v5  ;;  %v63_v8 = vmul.f32 %v882_v1, %v41_v6  ;;  %1101 = vmatpush3.msk.msra.mxu1 %vm244_vm0, %v1218_v0  ;;  %v64_v13 = vmul.f32 %v882_v1, %v42_v9  ;;  %v45_v16 = vld [vmem:[%s1475_s0 + $0x30] sm:$0xff]  ;;  %v46_v17 = vld [vmem:[%s1475_s0 + $0x38] sm:$0xff] }
   0x4   :  { %v1231_v3 = vld [vmem:[%s1477_s2] ss:$0 sm:$0xff]  ;;  %v61_v4 = vmul.f32 %v882_v1, %v39_v2  ;;  %1032 = vmatprep.subr.msk.mxu0 %vm244_vm0, %v1218_v0  ;;  %v66_v15 = vmul.f32 %v882_v1, %v44_v11  ;;  %v67_v21 = vmul.f32 %v882_v1, %v45_v16  ;;  %v68_v22 = vmul.f32 %v882_v1, %v46_v17  ;;  %v48_v23 = vld [vmem:[%s1475_s0 + $0x48] sm:$0xff]  ;;  %v49_v24 = vld [vmem:[%s1475_s0 + $0x50] sm:$0xff] }
   0x5   :  { %v43_v10 = vld [vmem:[%s1475_s0 + $0x20] sm:$0xff]  ;;  %v84_v19 = vadd.f32 %v1231_v3, %v62_v7  ;;  %v85_v20 = vadd.f32 %v1231_v3, %v63_v8  ;;  %v86_v25 = vadd.f32 %v1231_v3, %v64_v13  ;;  %v50_v27 = vld [vmem:[%s1475_s0 + $0x58] sm:$0xff]  ;;  %v70_v32 = vmul.f32 %v882_v1, %v48_v23  ;;  %v52_v34 = vld [vmem:[%s1475_s0 + $0x68] sm:$0xff] }
   0x6   :  { %v83_v12 = vadd.f32 %v1231_v3, %v61_v4  ;;  %v65_v14 = vmul.f32 %v882_v1, %v43_v10  ;;  %v47_v18 = vld [vmem:[%s1475_s0 + $0x40] sm:$0xff]  ;;  %v88_v28 = vadd.f32 %v1231_v3, %v66_v15  ;;  %v89_v31 = vadd.f32 %v1231_v3, %v67_v21 }
   0x7   :  { %v69_v29 = vmul.f32 %v882_v1, %v47_v18  ;;  %v51_v30 = vld [vmem:[%s1475_s0 + $0x60] sm:$0xff]  ;;  %v71_v33 = vmul.f32 %v882_v1, %v49_v24 }
   0x8   :  { %1121 = vtanh.f32 %v83_v12  ;;  %v87_v26 = vadd.f32 %v1231_v3, %v65_v14 }
   0x9   :  { %1123 = vtanh.f32 %v84_v19 }
   0xa   :  { %1125 = vtanh.f32 %v85_v20 }
   0xb   :  { %11 = vsyncpa [#allocation3], 0  ;;  %1127 = vtanh.f32 %v86_v25  ;;  %v90_v35 = vadd.f32 %v1231_v3, %v68_v22  ;;  %v72_v36 = vmul.f32 %v882_v1, %v50_v27  ;;  %v53_v37 = vld [vmem:[%s1475_s0 + $0x70] sm:$0xff]  ;;  %v28_v38 = vld [vmem:[%s1480_s5] sm:$0xff]  ;;  %v91_v40 = vadd.f32 %v1231_v3, %v69_v29 }
   0xc   :  { %v29_v39 = vld [vmem:[%s1480_s5 + $0x8] sm:$0xff]  ;;  %1129 = vtanh.f32 %v87_v26  ;;  %v73_v41 = vmul.f32 %v882_v1, %v51_v30  ;;  %v54_v42 = vld [vmem:[%s1475_s0 + $0x78] sm:$0xff]  ;;  %v92_v43 = vadd.f32 %v1231_v3, %v70_v32  ;;  %v74_v44 = vmul.f32 %v882_v1, %v52_v34 }
   0xd   :  { %1131 = vtanh.f32 %v88_v28  ;;  %v93_v45 = vadd.f32 %v1231_v3, %v71_v33  ;;  %v75_v46 = vmul.f32 %v882_v1, %v53_v37  ;;  %v1303_v47 = vpack.c.bf16 %v29_v39, %v28_v38 }
   0xe   :  { %1133 = vtanh.f32 %v89_v31  ;;  %v94_v48 = vadd.f32 %v1231_v3, %v72_v36  ;;  %v76_v49 = vmul.f32 %v882_v1, %v54_v42  ;;  %v95_v50 = vadd.f32 %v1231_v3, %v73_v41 }
   0xf   :  { %1135 = vtanh.f32 %v90_v35  ;;  %1093 = vmatprep.subr.bf16.mxu1 %v1303_v47  ;;  %v96_v51 = vadd.f32 %v1231_v3, %v74_v44  ;;  %v97_v53 = vadd.f32 %v1231_v3, %v75_v46  ;;  %vm195_vm1 = vcmask 31744  }
  0x10   :  { %1137 = vtanh.f32 %v91_v40  ;;  %v98_v56 = vadd.f32 %v1231_v3, %v76_v49  ;;  %vm656_vm2 = vcmask 326656  }
  0x11   :  { %1139 = vtanh.f32 %v92_v43 }
  0x12   :  { %v1122_v52 = vpop.eup %1121  ;;  %1141 = vtanh.f32 %v93_v45 }
  0x13   :  { %v1124_v54 = vpop.eup %1123  ;;  %v884_v55 = vclamps-f32 %v1122_v52, 0.99999  ;;  %1143 = vtanh.f32 %v94_v48 }
  0x14   :  { %v1126_v57 = vpop.eup %1125  ;;  %v885_v58 = vclamps-f32 %v1124_v54, 0.99999  ;;  %1145 = vtanh.f32 %v95_v50 }
  0x15   :  { %v1128_v59 = vpop.eup %1127  ;;  %v1311_v60 = vmul.f32 4.0, %v884_v55  ;;  %v886_v61 = vclamps-f32 %v1126_v57, 0.99999  ;;  %1147 = vtanh.f32 %v96_v51 }
  0x16   :  { %v1130_v62 = vpop.eup %1129  ;;  %v1313_v63 = vmul.f32 4.0, %v885_v58  ;;  %v887_v1 = vclamps-f32 %v1128_v59, 0.99999  ;;  %1149 = vtanh.f32 %v97_v53 }
  0x17   :  { %v1132_v2 = vpop.eup %1131  ;;  %v163_v4 = vfloor.f32 %v1311_v60  ;;  %v1316_v5 = vmul.f32 4.0, %v886_v61  ;;  %v888_v6 = vclamps-f32 %v1130_v62, 0.99999  ;;  %1151 = vtanh.f32 %v98_v56 }
  0x18   :  { %v1134_v3 = vpop.eup %1133  ;;  %v164_v7 = vfloor.f32 %v1313_v63  ;;  %v1319_v8 = vmul.f32 4.0, %v887_v1  ;;  %v889_v9 = vclamps-f32 %v1132_v2, 0.99999 }
  0x19   :  { %v1136_v10 = vpop.eup %1135  ;;  %v179_v11 = vsub.f32 %v1311_v60, %v163_v4  ;;  %v165_v12 = vfloor.f32 %v1316_v5  ;;  %v1325_v13 = vmul.f32 4.0, %v888_v6  ;;  %v890_v14 = vclamps-f32 %v1134_v3, 0.99999  ;;  %v30_v60 = vld [vmem:[%s1480_s5 + $0x10] sm:$0xff] }
  0x1a   :  { %v1138_v15 = vpop.eup %1137  ;;  %v180_v16 = vsub.f32 %v1313_v63, %v164_v7  ;;  %v166_v17 = vfloor.f32 %v1319_v8  ;;  %v1331_v18 = vmul.f32 4.0, %v889_v9  ;;  %v891_v19 = vclamps-f32 %v1136_v10, 0.99999  ;;  %v31_v63 = vld [vmem:[%s1480_s5 + $0x18] sm:$0xff] }
  0x1b   :  { %v1140_v20 = vpop.eup %1139  ;;  %1008 = vmatprep.mubr.msk.f32.mxu0 %vm195_vm1, %v179_v11  ;;  %v181_v21 = vsub.f32 %v1316_v5, %v165_v12  ;;  %v167_v22 = vfloor.f32 %v1325_v13  ;;  %v1338_v23 = vmul.f32 4.0, %v890_v14  ;;  %v892_v24 = vclamps-f32 %v1138_v15, 0.99999  ;;  %v32_v5 = vld [vmem:[%s1480_s5 + $0x20] sm:$0xff] }
  0x1c   :  { %v1142_v25 = vpop.eup %1141  ;;  %1009 = vmatmul.mubr.msk.f32.vlgmr.msra.gmra.mrb[0].mxu0 %vm195_vm1, %v180_v16  ;;  %v182_v26 = vsub.f32 %v1319_v8, %v166_v17  ;;  %v168_v27 = vfloor.f32 %v1331_v18  ;;  %v1345_v28 = vmul.f32 4.0, %v891_v19  ;;  %v893_v29 = vclamps-f32 %v1140_v20, 0.99999  ;;  %v1416_v15 = vld [vmem:[%s1479_s4] ss:$0 sm:$0xff]  ;;  %s1177_s4 = smov [#allocation2]  }
  0x1d   :  { %v1144_v30 = vpop.eup %1143  ;;  %1033 = vmatpush3.msk.msra.mxu0 %vm244_vm0, %v1218_v0  ;;  %1011 = vmatprep.mubr.msk.f32.mxu0 %vm195_vm1, %v181_v21  ;;  %v183_v31 = vsub.f32 %v1325_v13, %v167_v22  ;;  %v169_v32 = vfloor.f32 %v1338_v23  ;;  %v155_v33 = vmul.f32 4.0, %v892_v24  ;;  %v894_v34 = vclamps-f32 %v1142_v25, 0.99999  ;;  %s871_s5 = sshll.u32 %s1177_s4, 4  ;;  %s872_s5 = int_to_ptr.vmem [resolvable:$true] %s871_s5 }
  0x1e   :  { %v1146_v35 = vpop.eup %1145  ;;  %v184_v36 = vsub.f32 %v1331_v18, %v168_v27  ;;  %v156_v37 = vmul.f32 4.0, %v893_v29  ;;  %v895_v38 = vclamps-f32 %v1144_v30, 0.99999  ;;  %v170_v0 = vfloor.f32 %v1345_v28  ;;  %s1153_s16 = scalar_lea.vmem %s872_s5, 2048  ;;  %p1158_p1 = scmp.lt.s32.totalorder %s872_s5, %s872_s5 }
  0x1f   :  { %v1148_v39 = vpop.eup %1147  ;;  %v171_v40 = vfloor.f32 %v155_v33  ;;  %v157_v41 = vmul.f32 4.0, %v894_v34  ;;  %v896_v42 = vclamps-f32 %v1146_v35, 0.99999  ;;  %v185_v44 = vsub.f32 %v1338_v23, %v169_v32  ;;  %p1154_p0 = scmp.ne.s32.totalorder %s872_s5, %s1153_s16  ;;  %p1159_p2 = scmp.lt.s32.totalorder %s1153_s16, %s1153_s16 }
  0x20   :  { %v1150_v43 = vpop.eup %1149  ;;  %1012 = vmatmul.mubr.msk.f32.gmra.mrb[2].mxu0 %vm195_vm1, %v182_v26  ;;  %v172_v45 = vfloor.f32 %v156_v37  ;;  %v158_v46 = vmul.f32 4.0, %v895_v38  ;;  %v897_v48 = vclamps-f32 %v1148_v39, 0.99999  ;;  %v186_v62 = vsub.f32 %v1345_v28, %v170_v0 }
  0x21   :  { %v1152_v49 = vpop.eup %1151  ;;  %1014 = vmatprep.mubr.msk.f32.mxu0 %vm195_vm1, %v183_v31  ;;  %v187_v50 = vsub.f32 %v155_v33, %v171_v40  ;;  %v173_v51 = vfloor.f32 %v157_v41  ;;  %v159_v52 = vmul.f32 4.0, %v896_v42  ;;  %v898_v53 = vclamps-f32 %v1150_v43, 0.99999  ;;  %p1160_p3 = por %p1159_p2, %p1158_p1 }
  0x22   :  { %v188_v54 = vsub.f32 %v156_v37, %v172_v45  ;;  %v174_v55 = vfloor.f32 %v158_v46  ;;  %v160_v56 = vmul.f32 4.0, %v897_v48  ;;  %v899_v57 = vclamps-f32 %v1152_v49, 0.99999 }
  0x23   :  { %1020 = vmatprep.mubr.msk.f32.mxu1 %vm195_vm1, %v187_v50  ;;  %v189_v58 = vsub.f32 %v157_v41, %v173_v51  ;;  %v175_v59 = vfloor.f32 %v159_v52  ;;  %v161_v61 = vmul.f32 4.0, %v898_v53  ;;  %p1161_p4 = pnand %p1160_p3, %p1154_p0 }
  0x24   :  { %1015 = vmatmul.mubr.msk.f32.gmra.mrb[4].mxu0 %vm195_vm1, %v184_v36  ;;  %1021 = vmatmul.mubr.msk.f32.vlgmr.msra.gmra.mrb[0].mxu1 %vm195_vm1, %v188_v54  ;;  %v190_v1 = vsub.f32 %v158_v46, %v174_v55  ;;  %v176_v2 = vfloor.f32 %v160_v56  ;;  %v162_v6 = vmul.f32 4.0, %v899_v57 }
  0x25   :  { %1017 = vmatprep.mubr.msk.f32.mxu0 %vm195_vm1, %v185_v44  ;;  %1023 = vmatprep.mubr.msk.f32.mxu1 %vm195_vm1, %v189_v58  ;;  %v191_v3 = vsub.f32 %v159_v52, %v175_v59  ;;  %v177_v9 = vfloor.f32 %v161_v61 }
  0x26   :  { %1095 = vmatpush3.bf16.msra.mxu1 %v1303_v47  ;;  %v192_v10 = vsub.f32 %v160_v56, %v176_v2  ;;  %v178_v11 = vfloor.f32 %v162_v6 }
  0x27   :  { %v193_v14 = vsub.f32 %v161_v61, %v177_v9 }
  0x28   :  { %1018 = vmatmul.mubr.msk.f32.gmra.mrb[6].mxu0 %vm195_vm1, %v186_v62  ;;  %1024 = vmatmul.mubr.msk.f32.gmra.mrb[2].mxu1 %vm195_vm1, %v190_v1  ;;  %v194_v47 = vsub.f32 %v162_v6, %v178_v11 }
  0x29   :  { %1034 = vmatprep.mubr.msk.f32.mxu0 %vm195_vm1, %v163_v4  ;;  %1026 = vmatprep.mubr.msk.f32.mxu1 %vm195_vm1, %v191_v3  ;;  %v1096_v4 = vpack.c.bf16 %v31_v63, %v30_v60 }
  0x2b   :  { %1097 = vmatprep.subr.bf16.mxu1 %v1096_v4 }
  0x2c   :  { %1035 = vmatmul.mubr.msk.f32.vlgmr.msra.gmra.mrb[0].mxu0 %vm195_vm1, %v164_v7  ;;  %1027 = vmatmul.mubr.msk.f32.gmra.mrb[4].mxu1 %vm195_vm1, %v192_v10 }
  0x2d   :  { %1037 = vmatprep.mubr.msk.f32.mxu0 %vm195_vm1, %v165_v12  ;;  %1029 = vmatprep.mubr.msk.f32.mxu1 %vm195_vm1, %v193_v14 }
  0x2e   :  { %1099 = vmatpush3.bf16.msra.mxu1 %v1096_v4 }
  0x2f   :  { %1066 = vmatprep.subr.mxu1 %v32_v5 }
  0x30   :  { %1038 = vmatmul.mubr.msk.f32.gmra.mrb[2].mxu0 %vm195_vm1, %v166_v17  ;;  %1030 = vmatmul.mubr.msk.f32.gmra.mrb[6].mxu1 %vm195_vm1, %v194_v47 }
  0x31   :  { %1040 = vmatprep.mubr.msk.f32.mxu0 %vm195_vm1, %v167_v22 }
  0x32   :  { %1067 = vmatpush3.msra.mxu1 %v32_v5 }
  0x34   :  { %1041 = vmatmul.mubr.msk.f32.gmra.mrb[4].mxu0 %vm195_vm1, %v168_v27 }
  0x35   :  { %1043 = vmatprep.mubr.msk.f32.mxu0 %vm195_vm1, %v169_v32 }
  0x38   :  { %1044 = vmatmul.mubr.msk.f32.gmra.mrb[6].mxu0 %vm195_vm1, %v170_v0 }
  0x39   :  { %1046 = vmatprep.mubr.msk.f32.mxu0 %vm195_vm1, %v171_v40 }
  0x3c   :  { %1047 = vmatmul.mubr.msk.f32.gmra.mrb[8].mxu0 %vm195_vm1, %v172_v45 }
  0x3d   :  { %1049 = vmatprep.mubr.msk.f32.mxu0 %vm195_vm1, %v173_v51 }
  0x40   :  { %1050 = vmatmul.mubr.msk.f32.gmra.mrb[10].mxu0 %vm195_vm1, %v174_v55 }
  0x41   :  { %1052 = vmatprep.mubr.msk.f32.mxu0 %vm195_vm1, %v175_v59 }
  0x44   :  { %1053 = vmatmul.mubr.msk.f32.gmra.mrb[12].mxu0 %vm195_vm1, %v176_v2 }
  0x45   :  { %1055 = vmatprep.mubr.msk.f32.mxu0 %vm195_vm1, %v177_v9 }
  0x48   :  { %1056 = vmatmul.mubr.msk.f32.gmra.mrb[14].mxu0 %vm195_vm1, %v178_v11 }
  0xf7   :  { %v1022_v7 = vpop.f32.mrb[0].mxu1 }
  0xf8   :  { %v354_v8 = vpop.f32.mrb[1].mxu1 }
  0xfb   :  { %v1025_v12 = vpop.f32.mrb[2].mxu1 }
  0xfc   :  { %v1411_v13 = vpop.f32.mrb[3].mxu1 }
  0xff   :  { %v1036_v16 = vpop.f32.mrb[0].mxu0  ;;  %v1418_v17 = vpop.f32.mrb[4].mxu1 }
 0x100   :  { %v593_v18 = vsub.f32 %v1036_v16, %v1416_v15  ;;  %v507_v19 = vpop.f32.mrb[1].mxu0  ;;  %v1421_v20 = vpop.f32.mrb[5].mxu1 }
 0x101   :  { %v592_v21 = vsub.f32 %v507_v19, %v1416_v15 }
 0x102   :  { %v609_v22 = vand.u32 2147483647, %v593_v18 }
 0x103   :  { %v608_v23 = vand.u32 2147483647, %v592_v21  ;;  %v1039_v24 = vpop.f32.mrb[2].mxu0  ;;  %v1424_v25 = vpop.f32.mrb[6].mxu1 }
 0x104   :  { %v625_v26 = vsub.f32 1.0, %v609_v22  ;;  %v595_v27 = vsub.f32 %v1039_v24, %v1416_v15  ;;  %v517_v28 = vpop.f32.mrb[3].mxu0  ;;  %v1427_v29 = vpop.f32.mrb[7].mxu1 }
 0x105   :  { %v624_v30 = vsub.f32 1.0, %v608_v23  ;;  %v594_v31 = vsub.f32 %v517_v28, %v1416_v15 }
 0x106   :  { %v611_v32 = vand.u32 2147483647, %v595_v27  ;;  %v641_v36 = vmax.f32 %v625_v26, 0.0 }
 0x107   :  { %v640_v33 = vmax.f32 %v624_v30, 0.0  ;;  %v610_v34 = vand.u32 2147483647, %v594_v31  ;;  %v1042_v35 = vpop.f32.mrb[4].mxu0 }
 0x108   :  { %v627_v37 = vsub.f32 1.0, %v611_v32  ;;  %v597_v38 = vsub.f32 %v1042_v35, %v1416_v15  ;;  %v527_v39 = vpop.f32.mrb[5].mxu0 }
 0x109   :  { %v626_v0 = vsub.f32 1.0, %v610_v34  ;;  %v596_v40 = vsub.f32 %v527_v39, %v1416_v15  ;;  %1068 = vmatprep.mubr.msk.f32.mxu1 %vm656_vm2, %v640_v33 }
 0x10a   :  { %v613_v41 = vand.u32 2147483647, %v597_v38  ;;  %1069 = vmatmul.mubr.msk.f32.vlgmr.msra.gmra.mrb[8].mxu1 %vm656_vm2, %v641_v36  ;;  %v643_v45 = vmax.f32 %v627_v37, 0.0 }
 0x10b   :  { %v642_v42 = vmax.f32 %v626_v0, 0.0  ;;  %v612_v43 = vand.u32 2147483647, %v596_v40  ;;  %v1045_v44 = vpop.f32.mrb[6].mxu0 }
 0x10c   :  { %v629_v46 = vsub.f32 1.0, %v613_v41  ;;  %v599_v48 = vsub.f32 %v1045_v44, %v1416_v15  ;;  %v537_v49 = vpop.f32.mrb[7].mxu0 }
 0x10d   :  { %v628_v50 = vsub.f32 1.0, %v612_v43  ;;  %v598_v51 = vsub.f32 %v537_v49, %v1416_v15  ;;  %1071 = vmatprep.mubr.msk.f32.mxu1 %vm656_vm2, %v642_v42 }
 0x10e   :  { %v615_v52 = vand.u32 2147483647, %v599_v48  ;;  %1072 = vmatmul.mubr.msk.f32.gmra.mrb[10].mxu1 %vm656_vm2, %v643_v45  ;;  %v645_v56 = vmax.f32 %v629_v46, 0.0 }
 0x10f   :  { %v644_v53 = vmax.f32 %v628_v50, 0.0  ;;  %v614_v54 = vand.u32 2147483647, %v598_v51  ;;  %v1048_v55 = vpop.f32.mrb[8].mxu0 }
 0x110   :  { %v631_v57 = vsub.f32 1.0, %v615_v52  ;;  %v553_v58 = vadd.f32 %v1048_v55, %v1022_v7  ;;  %v547_v59 = vpop.f32.mrb[9].mxu0 }
 0x111   :  { %v630_v61 = vsub.f32 1.0, %v614_v54  ;;  %v548_v62 = vadd.f32 %v547_v59, %v354_v8  ;;  %1074 = vmatprep.mubr.msk.f32.mxu1 %vm656_vm2, %v644_v53 }
 0x112   :  { %v601_v1 = vsub.f32 %v553_v58, %v1416_v15  ;;  %1075 = vmatmul.mubr.msk.f32.gmra.mrb[12].mxu1 %vm656_vm2, %v645_v56  ;;  %v647_v9 = vmax.f32 %v631_v57, 0.0 }
 0x113   :  { %v646_v2 = vmax.f32 %v630_v61, 0.0  ;;  %v600_v6 = vsub.f32 %v548_v62, %v1416_v15  ;;  %v1051_v3 = vpop.f32.mrb[10].mxu0 }
 0x114   :  { %v617_v10 = vand.u32 2147483647, %v601_v1  ;;  %v563_v11 = vadd.f32 %v1051_v3, %v1025_v12  ;;  %v557_v14 = vpop.f32.mrb[11].mxu0 }
 0x115   :  { %v616_v47 = vand.u32 2147483647, %v600_v6  ;;  %v558_v60 = vadd.f32 %v557_v14, %v1411_v13  ;;  %1077 = vmatprep.mubr.msk.f32.mxu1 %vm656_vm2, %v646_v2 }
 0x116   :  { %v633_v63 = vsub.f32 1.0, %v617_v10  ;;  %v603_v4 = vsub.f32 %v563_v11, %v1416_v15  ;;  %1078 = vmatmul.mubr.msk.f32.gmra.mrb[14].mxu1 %vm656_vm2, %v647_v9 }
 0x117   :  { %v632_v5 = vsub.f32 1.0, %v616_v47  ;;  %v602_v7 = vsub.f32 %v558_v60, %v1416_v15  ;;  %v1054_v8 = vpop.f32.mrb[12].mxu0 }
 0x118   :  { %v619_v16 = vand.u32 2147483647, %v603_v4  ;;  %v573_v18 = vadd.f32 %v1054_v8, %v1418_v17  ;;  %v567_v19 = vpop.f32.mrb[13].mxu0  ;;  %v649_v13 = vmax.f32 %v633_v63, 0.0 }
 0x119   :  { %v648_v12 = vmax.f32 %v632_v5, 0.0  ;;  %v618_v21 = vand.u32 2147483647, %v602_v7  ;;  %v568_v22 = vadd.f32 %v567_v19, %v1421_v20 }
 0x11a   :  { %v635_v23 = vsub.f32 1.0, %v619_v16  ;;  %v605_v24 = vsub.f32 %v573_v18, %v1416_v15 }
 0x11b   :  { %v634_v26 = vsub.f32 1.0, %v618_v21  ;;  %v604_v27 = vsub.f32 %v568_v22, %v1416_v15  ;;  %v1057_v28 = vpop.f32.mrb[14].mxu0  ;;  %1080 = vmatprep.mubr.msk.f32.mxu1 %vm656_vm2, %v648_v12 }
 0x11c   :  { %v621_v30 = vand.u32 2147483647, %v605_v24  ;;  %v583_v31 = vadd.f32 %v1057_v28, %v1424_v25  ;;  %v577_v32 = vpop.f32.mrb[15].mxu0  ;;  %1081 = vmatmul.mubr.msk.f32.gmra.mrb[16].mxu1 %vm656_vm2, %v649_v13  ;;  %v651_v34 = vmax.f32 %v635_v23, 0.0 }
 0x11d   :  { %v650_v17 = vmax.f32 %v634_v26, 0.0  ;;  %v620_v33 = vand.u32 2147483647, %v604_v27  ;;  %v578_v20 = vadd.f32 %v577_v32, %v1427_v29 }
 0x11e   :  { %v637_v35 = vsub.f32 1.0, %v621_v30  ;;  %v607_v36 = vsub.f32 %v583_v31, %v1416_v15 }
 0x11f   :  { %v636_v37 = vsub.f32 1.0, %v620_v33  ;;  %v606_v38 = vsub.f32 %v578_v20, %v1416_v15  ;;  %1083 = vmatprep.mubr.msk.f32.mxu1 %vm656_vm2, %v650_v17 }
 0x120   :  { %v623_v39 = vand.u32 2147483647, %v607_v36  ;;  %1084 = vmatmul.mubr.msk.f32.gmra.mrb[18].mxu1 %vm656_vm2, %v651_v34  ;;  %v653_v40 = vmax.f32 %v637_v35, 0.0 }
 0x121   :  { %v652_v25 = vmax.f32 %v636_v37, 0.0  ;;  %v622_v0 = vand.u32 2147483647, %v606_v38 }
 0x122   :  { %v639_v41 = vsub.f32 1.0, %v623_v39 }
 0x123   :  { %v638_v42 = vsub.f32 1.0, %v622_v0  ;;  %1086 = vmatprep.mubr.msk.f32.mxu1 %vm656_vm2, %v652_v25 }
 0x124   :  { %1087 = vmatmul.mubr.msk.f32.gmra.mrb[20].mxu1 %vm656_vm2, %v653_v40  ;;  %v655_v43 = vmax.f32 %v639_v41, 0.0 }
 0x125   :  { %v654_v29 = vmax.f32 %v638_v42, 0.0 }
 0x127   :  { %1089 = vmatprep.mubr.msk.f32.mxu1 %vm656_vm2, %v654_v29 }
 0x128   :  { %1090 = vmatmul.mubr.msk.f32.gmra.mrb[22].mxu1 %vm656_vm2, %v655_v43 }
 0x1dd   :  { %v1070_v15 = vpop.f32.mrb[8].mxu1 }
 0x1de   :  { %851 = vst [vmem:[#allocation2 + $0x8] sm:$0xff] %v1070_v15  ;;  %v771_v44 = vpop.f32.mrb[9].mxu1 }
 0x1df   :  { %850 = vst [vmem:[#allocation2] sm:$0xff] %v771_v44 }
 0x1e1   :  { %v1073_v45 = vpop.f32.mrb[10].mxu1 }
 0x1e2   :  { %853 = vst [vmem:[#allocation2 + $0x18] sm:$0xff] %v1073_v45  ;;  %v781_v46 = vpop.f32.mrb[11].mxu1 }
 0x1e3   :  { %852 = vst [vmem:[#allocation2 + $0x10] sm:$0xff] %v781_v46 }
 0x1e5   :  { %v1076_v48 = vpop.f32.mrb[12].mxu1 }
 0x1e6   :  { %855 = vst [vmem:[#allocation2 + $0x28] sm:$0xff] %v1076_v48  ;;  %v791_v49 = vpop.f32.mrb[13].mxu1 }
 0x1e7   :  { %854 = vst [vmem:[#allocation2 + $0x20] sm:$0xff] %v791_v49 }
 0x1e9   :  { %v1079_v50 = vpop.f32.mrb[14].mxu1 }
 0x1ea   :  { %857 = vst [vmem:[#allocation2 + $0x38] sm:$0xff] %v1079_v50  ;;  %v801_v51 = vpop.f32.mrb[15].mxu1 }
 0x1eb   :  { %856 = vst [vmem:[#allocation2 + $0x30] sm:$0xff] %v801_v51 }
 0x1ef   :  { %v1082_v52 = vpop.f32.mrb[16].mxu1 }
 0x1f0   :  { %859 = vst [vmem:[#allocation2 + $0x48] sm:$0xff] %v1082_v52  ;;  %v811_v53 = vpop.f32.mrb[17].mxu1 }
 0x1f1   :  { %858 = vst [vmem:[#allocation2 + $0x40] sm:$0xff] %v811_v53 }
 0x1f3   :  { %v1085_v54 = vpop.f32.mrb[18].mxu1 }
 0x1f4   :  { %861 = vst [vmem:[#allocation2 + $0x58] sm:$0xff] %v1085_v54  ;;  %v821_v55 = vpop.f32.mrb[19].mxu1 }
 0x1f5   :  { %860 = vst [vmem:[#allocation2 + $0x50] sm:$0xff] %v821_v55 }
 0x1f7   :  { %v1088_v56 = vpop.f32.mrb[20].mxu1 }
 0x1f8   :  { %863 = vst [vmem:[#allocation2 + $0x68] sm:$0xff] %v1088_v56  ;;  %v831_v57 = vpop.f32.mrb[21].mxu1 }
 0x1f9   :  { %862 = vst [vmem:[#allocation2 + $0x60] sm:$0xff] %v831_v57 }
 0x1fb   :  { %v1091_v58 = vpop.f32.mrb[22].mxu1 }
 0x1fc   :  { %865 = vst [vmem:[#allocation2 + $0x78] sm:$0xff] %v1091_v58  ;;  %v841_v59 = vpop.f32.mrb[23].mxu1 }
 0x1fd   :  { %864 = vst [vmem:[#allocation2 + $0x70] sm:$0xff] %v841_v59 }
 0x1fe   :  { %1164 = shalt.err (!%p1161_p4)
}
 0x1ff   :  { %s1165_s19 = scalar_lea.hbm %s1481_s6, 2048 }
 0x200   :  { %p1166_p5 = scmp.ne.s32.totalorder %s1481_s6, %s1165_s19  ;;  %p1169_p6 = scmp.lt.u32.totalorder %s1165_s19, %s1481_s6 }
 0x202   :  { %p1171_p7 = pnand %p1169_p6, %p1166_p5 }
 0x204   :  { %1174 = shalt.err (!%p1171_p7)
}
 0x205   :  { %s1178_s24 = smov 128   ;;  %s1179_s25 = smov 8  }
 0x206   :  { %877 = dma.vmem_to_hbm [thread:$0]  %s872_s5, 2048, %s1481_s6, [#allocation3], %s1178_s24, %s1178_s24, %s1179_s25  }
 0x207   :  { %1175 = dma.done.wait [#allocation3], 2048  }
 0x208   :  { %1176 = vsyncadd [#allocation3], 4294965248 }
 0x209   :  { %881 = vsyncpa [#allocation3], 1 }

</bundles_post_ra>
